<compile_context>
chip_gen: v7x
topology: tpu7x:2x2x1
jax: 0.10.0
libtpu: 0.0.40
codegen_flags: <defaults>
</compile_context>

<pallas_src>
import jax
import jax.numpy as jnp
from jax.experimental import pallas as pl
from jax.experimental.pallas import tpu as pltpu

_UNROLL = 8                          # rows issued per pl.loop iteration
_OUT_BUF_BUDGET = 8 * 1024 * 1024    # bytes for the double-buffered output tile
_MAX_TM = 1024
_VMEM_LIMIT = 32 * 1024 * 1024       # safe on v5e/v6e (128 MiB) and v7x (64 MiB)


def _round_up(x: int, m: int) -> int:
    return (x + m - 1) // m * m


def _make_embed_kernel(tm: int, unroll: int):
    """Kernel gathering `tm` embedding rows from HBM into the output tile."""
    assert tm % unroll == 0

    def kernel(tok_ref, w_hbm_ref, out_ref, sem):
        # tok_ref  : SMEM (n_padded,) int32   — scalar-prefetched flat token ids
        # w_hbm_ref: HBM  (d_vocab, d_model)  — full embedding table (pl.ANY)
        # out_ref  : VMEM (tm, d_model)       — pipelined output tile
        # sem      : DMA semaphore, shape (1,)
        base = pl.program_id(0) * tm

        def issue(r):
            tok = tok_ref[base + r]                       # SMEM read before any wait
            pltpu.make_async_copy(
                w_hbm_ref.at[pl.ds(tok, 1), :],           # (1, d_model) row in HBM
                out_ref.at[pl.ds(r, 1), :],               # (1, d_model) row of tile
                sem.at[0],
            ).start()

        # Issue ALL tm row DMAs (fully decoupled from completion); the hardware
        # DMA queue backpressures if it fills, which is exactly the roofline.
        @pl.loop(0, tm // unroll)
        def _(step):
            r0 = pl.multiple_of(step * unroll, unroll)
            for u in range(unroll):                       # manual unroll by 8
                issue(r0 + u)

        # Single aggregate wait: each row copy signals d_model*itemsize bytes on
        # `sem`; waiting on a descriptor sized like the whole tile (tm rows)
        # completes only once every row copy has landed.
        pltpu.make_async_copy(out_ref, out_ref, sem.at[0]).wait()

    return kernel


@jax.jit
def embed(tokens: jax.Array, W_E: jax.Array) -> jax.Array:
    """Equivalent of Embed.forward: out[i, j] = W_E[tokens[i, j]]."""
    batch, seq = tokens.shape
    d_vocab, d_model = W_E.shape
    n = batch * seq

    itemsize = jnp.dtype(W_E.dtype).itemsize
    row_bytes = d_model * itemsize

    # Chunk size: as large as the VMEM budget allows (double-buffered output),
    # capped, multiple of 8 (sublane-dense and == unroll factor).
    tm = min(_MAX_TM, max(_UNROLL, _OUT_BUF_BUDGET // (2 * row_bytes)))
    tm = max(_UNROLL, (tm // _UNROLL) * _UNROLL)
    if n < tm:
        tm = _round_up(n, _UNROLL)
    n_chunks = _round_up(n, tm) // tm
    n_padded = n_chunks * tm

    # Clamp ids (safety net: nn.Embedding would error on OOB; here we never
    # turn a bad id into an out-of-bounds DMA).  Pad only the tiny id vector.
    flat = jnp.clip(tokens.reshape(-1).astype(jnp.int32), 0, d_vocab - 1)
    if n_padded > n:
        flat = jnp.pad(flat, (0, n_padded - n))           # pad with token 0

    out = pl.pallas_call(
        _make_embed_kernel(tm, _UNROLL),
        out_shape=jax.ShapeDtypeStruct((n, d_model), W_E.dtype),   # unpadded
        grid_spec=pltpu.PrefetchScalarGridSpec(
            num_scalar_prefetch=1,                         # token ids -> SMEM
            grid=(n_chunks,),
            in_specs=[pl.BlockSpec(memory_space=pl.ANY)],  # W_E stays in HBM
            out_specs=pl.BlockSpec((tm, d_model), lambda i, tok: (i, 0)),
            scratch_shapes=[pltpu.SemaphoreType.DMA((1,))],
        ),
        compiler_params=pltpu.CompilerParams(
            dimension_semantics=("parallel",),             # v7x: 2 TCs split chunks
            vmem_limit_bytes=_VMEM_LIMIT,
        ),
        cost_estimate=pl.CostEstimate(
            flops=0,
            transcendentals=0,
            bytes_accessed=int((n_padded + n) * row_bytes + 4 * n_padded),
        ),
    )(flat, W_E)

    return out.reshape(batch, seq, d_model)


if __name__ == "__main__":
    # Small deterministic shapes consistent with the module
    # (d_vocab / d_model scaled down from 50257 / 768).
    init_range = 0.02
    key = jax.random.PRNGKey(0)
    k_w, k_tok1, k_tok2 = jax.random.split(key, 3)

    d_vocab, d_model = 256, 128
    # nn.init.normal_(W_E, std=init_range)
    W_E = (init_range * jax.random.normal(k_w, (d_vocab, d_model))).astype(jnp.float32)

    # Case 1: tiny batch (single partially-filled chunk, TM rounded to 16).
    tokens1 = jax.random.randint(k_tok1, (2, 8), 0, d_vocab, dtype=jnp.int32)
    out1 = embed(tokens1, W_E)
    jax.block_until_ready(out1)
    ref1 = jnp.take(W_E, tokens1, axis=0)
    assert out1.shape == (2, 8, d_model)
    assert out1.dtype == W_E.dtype
    assert jnp.array_equal(out1, ref1), "mismatch vs reference gather (case 1)"

    # Case 2: multi-chunk path with a partial last output block
    # (n = 1040 -> 2 chunks of TM=1024, last block has 16 valid rows).
    tokens2 = jax.random.randint(k_tok2, (2, 520), 0, d_vocab, dtype=jnp.int32)
    out2 = embed(tokens2, W_E)
    jax.block_until_ready(out2)
    ref2 = jnp.take(W_E, tokens2, axis=0)
    assert out2.shape == (2, 520, d_model)
    assert jnp.array_equal(out2, ref2), "mismatch vs reference gather (case 2)"

    print("KERNEL_OK")
</pallas_src>

<mosaic_0001>
module attributes {stable_mosaic.version = 11 : i64} {
  func.func @kernel(%arg0: i32, %arg1: memref<16xi32, #tpu.memory_space<smem>>, %arg2: memref<256x128xf32, #tpu.memory_space<any>>, %arg3: memref<16x128xf32, #tpu.memory_space<vmem>>, %arg4: memref<1x!tpu.dma_semaphore, #tpu.memory_space<semaphore_mem>>) attributes {dimension_semantics = [#tpu.dimension_semantics<parallel>], iteration_bounds = array<i64: 1>, scalar_prefetch = 1 : i64, scratch_operands = 1 : i64, tpu.core_type = #tpu.core_type<tc>, window_params = [{}, {transform_indices = @transform_1, window_bounds = array<i64: 16, 128>}]} {
    %c16_i32 = arith.constant 16 : i32
    %0 = arith.muli %arg0, %c16_i32 : i32
    %c0_i32 = arith.constant 0 : i32
    %c2_i32 = arith.constant 2 : i32
    %1 = arith.addi %c0_i32, %c2_i32 : i32
    %c1_i32 = arith.constant 1 : i32
    scf.for %arg5 = %c0_i32 to %1 step %c1_i32  : i32 {
      %c1_i32_2 = arith.constant 1 : i32
      %4 = arith.muli %arg5, %c1_i32_2 : i32
      %c0_i32_3 = arith.constant 0 : i32
      %5 = arith.addi %c0_i32_3, %4 : i32
      %c8_i32 = arith.constant 8 : i32
      %6 = arith.muli %5, %c8_i32 : i32
      %7 = tpu.assume_multiple %6, 8 : i32
      %c0_i32_4 = arith.constant 0 : i32
      %8 = arith.addi %7, %c0_i32_4 : i32
      %9 = arith.addi %0, %8 : i32
      %10 = arith.index_cast %9 : i32 to index
      %11 = memref.load %arg1[%10] : memref<16xi32, #tpu.memory_space<smem>>
      %c0_i32_5 = arith.constant 0 : i32
      %c0_i32_6 = arith.constant 0 : i32
      %12 = tpu.memref_slice %arg2[%11, %c0_i32_6] : memref<256x128xf32, #tpu.memory_space<any>> -> memref<1x128xf32, #tpu.memory_space<any>>
      %c0_i32_7 = arith.constant 0 : i32
      %13 = tpu.memref_slice %arg3[%8, %c0_i32_7] : memref<16x128xf32, #tpu.memory_space<vmem>> -> memref<1x128xf32, #tpu.memory_space<vmem>>
      %14 = tpu.memref_slice %arg4[%c0_i32_5] : memref<1x!tpu.dma_semaphore, #tpu.memory_space<semaphore_mem>> -> memref<1x!tpu.dma_semaphore, #tpu.memory_space<semaphore_mem>>
      %15 = tpu.memref_squeeze %14 : memref<1x!tpu.dma_semaphore, #tpu.memory_space<semaphore_mem>> -> memref<!tpu.dma_semaphore, #tpu.memory_space<semaphore_mem>>
      tpu.enqueue_dma source(%12 : memref<1x128xf32, #tpu.memory_space<any>>) target(%13 : memref<1x128xf32, #tpu.memory_space<vmem>>) target_semaphore(%15 : memref<!tpu.dma_semaphore, #tpu.memory_space<semaphore_mem>>)
      %c1_i32_8 = arith.constant 1 : i32
      %16 = arith.addi %7, %c1_i32_8 : i32
      %17 = arith.addi %0, %16 : i32
      %18 = arith.index_cast %17 : i32 to index
      %19 = memref.load %arg1[%18] : memref<16xi32, #tpu.memory_space<smem>>
      %c0_i32_9 = arith.constant 0 : i32
      %c0_i32_10 = arith.constant 0 : i32
      %20 = tpu.memref_slice %arg2[%19, %c0_i32_10] : memref<256x128xf32, #tpu.memory_space<any>> -> memref<1x128xf32, #tpu.memory_space<any>>
      %c0_i32_11 = arith.constant 0 : i32
      %21 = tpu.memref_slice %arg3[%16, %c0_i32_11] : memref<16x128xf32, #tpu.memory_space<vmem>> -> memref<1x128xf32, #tpu.memory_space<vmem>>
      %22 = tpu.memref_slice %arg4[%c0_i32_9] : memref<1x!tpu.dma_semaphore, #tpu.memory_space<semaphore_mem>> -> memref<1x!tpu.dma_semaphore, #tpu.memory_space<semaphore_mem>>
      %23 = tpu.memref_squeeze %22 : memref<1x!tpu.dma_semaphore, #tpu.memory_space<semaphore_mem>> -> memref<!tpu.dma_semaphore, #tpu.memory_space<semaphore_mem>>
      tpu.enqueue_dma source(%20 : memref<1x128xf32, #tpu.memory_space<any>>) target(%21 : memref<1x128xf32, #tpu.memory_space<vmem>>) target_semaphore(%23 : memref<!tpu.dma_semaphore, #tpu.memory_space<semaphore_mem>>)
      %c2_i32_12 = arith.constant 2 : i32
      %24 = arith.addi %7, %c2_i32_12 : i32
      %25 = arith.addi %0, %24 : i32
      %26 = arith.index_cast %25 : i32 to index
      %27 = memref.load %arg1[%26] : memref<16xi32, #tpu.memory_space<smem>>
      %c0_i32_13 = arith.constant 0 : i32
      %c0_i32_14 = arith.constant 0 : i32
      %28 = tpu.memref_slice %arg2[%27, %c0_i32_14] : memref<256x128xf32, #tpu.memory_space<any>> -> memref<1x128xf32, #tpu.memory_space<any>>
      %c0_i32_15 = arith.constant 0 : i32
      %29 = tpu.memref_slice %arg3[%24, %c0_i32_15] : memref<16x128xf32, #tpu.memory_space<vmem>> -> memref<1x128xf32, #tpu.memory_space<vmem>>
      %30 = tpu.memref_slice %arg4[%c0_i32_13] : memref<1x!tpu.dma_semaphore, #tpu.memory_space<semaphore_mem>> -> memref<1x!tpu.dma_semaphore, #tpu.memory_space<semaphore_mem>>
      %31 = tpu.memref_squeeze %30 : memref<1x!tpu.dma_semaphore, #tpu.memory_space<semaphore_mem>> -> memref<!tpu.dma_semaphore, #tpu.memory_space<semaphore_mem>>
      tpu.enqueue_dma source(%28 : memref<1x128xf32, #tpu.memory_space<any>>) target(%29 : memref<1x128xf32, #tpu.memory_space<vmem>>) target_semaphore(%31 : memref<!tpu.dma_semaphore, #tpu.memory_space<semaphore_mem>>)
      %c3_i32 = arith.constant 3 : i32
      %32 = arith.addi %7, %c3_i32 : i32
      %33 = arith.addi %0, %32 : i32
      %34 = arith.index_cast %33 : i32 to index
      %35 = memref.load %arg1[%34] : memref<16xi32, #tpu.memory_space<smem>>
      %c0_i32_16 = arith.constant 0 : i32
      %c0_i32_17 = arith.constant 0 : i32
      %36 = tpu.memref_slice %arg2[%35, %c0_i32_17] : memref<256x128xf32, #tpu.memory_space<any>> -> memref<1x128xf32, #tpu.memory_space<any>>
      %c0_i32_18 = arith.constant 0 : i32
      %37 = tpu.memref_slice %arg3[%32, %c0_i32_18] : memref<16x128xf32, #tpu.memory_space<vmem>> -> memref<1x128xf32, #tpu.memory_space<vmem>>
      %38 = tpu.memref_slice %arg4[%c0_i32_16] : memref<1x!tpu.dma_semaphore, #tpu.memory_space<semaphore_mem>> -> memref<1x!tpu.dma_semaphore, #tpu.memory_space<semaphore_mem>>
      %39 = tpu.memref_squeeze %38 : memref<1x!tpu.dma_semaphore, #tpu.memory_space<semaphore_mem>> -> memref<!tpu.dma_semaphore, #tpu.memory_space<semaphore_mem>>
      tpu.enqueue_dma source(%36 : memref<1x128xf32, #tpu.memory_space<any>>) target(%37 : memref<1x128xf32, #tpu.memory_space<vmem>>) target_semaphore(%39 : memref<!tpu.dma_semaphore, #tpu.memory_space<semaphore_mem>>)
      %c4_i32 = arith.constant 4 : i32
      %40 = arith.addi %7, %c4_i32 : i32
      %41 = arith.addi %0, %40 : i32
      %42 = arith.index_cast %41 : i32 to index
      %43 = memref.load %arg1[%42] : memref<16xi32, #tpu.memory_space<smem>>
      %c0_i32_19 = arith.constant 0 : i32
      %c0_i32_20 = arith.constant 0 : i32
      %44 = tpu.memref_slice %arg2[%43, %c0_i32_20] : memref<256x128xf32, #tpu.memory_space<any>> -> memref<1x128xf32, #tpu.memory_space<any>>
      %c0_i32_21 = arith.constant 0 : i32
      %45 = tpu.memref_slice %arg3[%40, %c0_i32_21] : memref<16x128xf32, #tpu.memory_space<vmem>> -> memref<1x128xf32, #tpu.memory_space<vmem>>
      %46 = tpu.memref_slice %arg4[%c0_i32_19] : memref<1x!tpu.dma_semaphore, #tpu.memory_space<semaphore_mem>> -> memref<1x!tpu.dma_semaphore, #tpu.memory_space<semaphore_mem>>
      %47 = tpu.memref_squeeze %46 : memref<1x!tpu.dma_semaphore, #tpu.memory_space<semaphore_mem>> -> memref<!tpu.dma_semaphore, #tpu.memory_space<semaphore_mem>>
      tpu.enqueue_dma source(%44 : memref<1x128xf32, #tpu.memory_space<any>>) target(%45 : memref<1x128xf32, #tpu.memory_space<vmem>>) target_semaphore(%47 : memref<!tpu.dma_semaphore, #tpu.memory_space<semaphore_mem>>)
      %c5_i32 = arith.constant 5 : i32
      %48 = arith.addi %7, %c5_i32 : i32
      %49 = arith.addi %0, %48 : i32
      %50 = arith.index_cast %49 : i32 to index
      %51 = memref.load %arg1[%50] : memref<16xi32, #tpu.memory_space<smem>>
      %c0_i32_22 = arith.constant 0 : i32
      %c0_i32_23 = arith.constant 0 : i32
      %52 = tpu.memref_slice %arg2[%51, %c0_i32_23] : memref<256x128xf32, #tpu.memory_space<any>> -> memref<1x128xf32, #tpu.memory_space<any>>
      %c0_i32_24 = arith.constant 0 : i32
      %53 = tpu.memref_slice %arg3[%48, %c0_i32_24] : memref<16x128xf32, #tpu.memory_space<vmem>> -> memref<1x128xf32, #tpu.memory_space<vmem>>
      %54 = tpu.memref_slice %arg4[%c0_i32_22] : memref<1x!tpu.dma_semaphore, #tpu.memory_space<semaphore_mem>> -> memref<1x!tpu.dma_semaphore, #tpu.memory_space<semaphore_mem>>
      %55 = tpu.memref_squeeze %54 : memref<1x!tpu.dma_semaphore, #tpu.memory_space<semaphore_mem>> -> memref<!tpu.dma_semaphore, #tpu.memory_space<semaphore_mem>>
      tpu.enqueue_dma source(%52 : memref<1x128xf32, #tpu.memory_space<any>>) target(%53 : memref<1x128xf32, #tpu.memory_space<vmem>>) target_semaphore(%55 : memref<!tpu.dma_semaphore, #tpu.memory_space<semaphore_mem>>)
      %c6_i32 = arith.constant 6 : i32
      %56 = arith.addi %7, %c6_i32 : i32
      %57 = arith.addi %0, %56 : i32
      %58 = arith.index_cast %57 : i32 to index
      %59 = memref.load %arg1[%58] : memref<16xi32, #tpu.memory_space<smem>>
      %c0_i32_25 = arith.constant 0 : i32
      %c0_i32_26 = arith.constant 0 : i32
      %60 = tpu.memref_slice %arg2[%59, %c0_i32_26] : memref<256x128xf32, #tpu.memory_space<any>> -> memref<1x128xf32, #tpu.memory_space<any>>
      %c0_i32_27 = arith.constant 0 : i32
      %61 = tpu.memref_slice %arg3[%56, %c0_i32_27] : memref<16x128xf32, #tpu.memory_space<vmem>> -> memref<1x128xf32, #tpu.memory_space<vmem>>
      %62 = tpu.memref_slice %arg4[%c0_i32_25] : memref<1x!tpu.dma_semaphore, #tpu.memory_space<semaphore_mem>> -> memref<1x!tpu.dma_semaphore, #tpu.memory_space<semaphore_mem>>
      %63 = tpu.memref_squeeze %62 : memref<1x!tpu.dma_semaphore, #tpu.memory_space<semaphore_mem>> -> memref<!tpu.dma_semaphore, #tpu.memory_space<semaphore_mem>>
      tpu.enqueue_dma source(%60 : memref<1x128xf32, #tpu.memory_space<any>>) target(%61 : memref<1x128xf32, #tpu.memory_space<vmem>>) target_semaphore(%63 : memref<!tpu.dma_semaphore, #tpu.memory_space<semaphore_mem>>)
      %c7_i32 = arith.constant 7 : i32
      %64 = arith.addi %7, %c7_i32 : i32
      %65 = arith.addi %0, %64 : i32
      %66 = arith.index_cast %65 : i32 to index
      %67 = memref.load %arg1[%66] : memref<16xi32, #tpu.memory_space<smem>>
      %c0_i32_28 = arith.constant 0 : i32
      %c0_i32_29 = arith.constant 0 : i32
      %68 = tpu.memref_slice %arg2[%67, %c0_i32_29] : memref<256x128xf32, #tpu.memory_space<any>> -> memref<1x128xf32, #tpu.memory_space<any>>
      %c0_i32_30 = arith.constant 0 : i32
      %69 = tpu.memref_slice %arg3[%64, %c0_i32_30] : memref<16x128xf32, #tpu.memory_space<vmem>> -> memref<1x128xf32, #tpu.memory_space<vmem>>
      %70 = tpu.memref_slice %arg4[%c0_i32_28] : memref<1x!tpu.dma_semaphore, #tpu.memory_space<semaphore_mem>> -> memref<1x!tpu.dma_semaphore, #tpu.memory_space<semaphore_mem>>
      %71 = tpu.memref_squeeze %70 : memref<1x!tpu.dma_semaphore, #tpu.memory_space<semaphore_mem>> -> memref<!tpu.dma_semaphore, #tpu.memory_space<semaphore_mem>>
      tpu.enqueue_dma source(%68 : memref<1x128xf32, #tpu.memory_space<any>>) target(%69 : memref<1x128xf32, #tpu.memory_space<vmem>>) target_semaphore(%71 : memref<!tpu.dma_semaphore, #tpu.memory_space<semaphore_mem>>)
    }
    %c2_i32_0 = arith.constant 2 : i32
    %c0_i32_1 = arith.constant 0 : i32
    %2 = tpu.memref_slice %arg4[%c0_i32_1] : memref<1x!tpu.dma_semaphore, #tpu.memory_space<semaphore_mem>> -> memref<1x!tpu.dma_semaphore, #tpu.memory_space<semaphore_mem>>
    %3 = tpu.memref_squeeze %2 : memref<1x!tpu.dma_semaphore, #tpu.memory_space<semaphore_mem>> -> memref<!tpu.dma_semaphore, #tpu.memory_space<semaphore_mem>>
    tpu.wait_dma2 semaphore(%3 : memref<!tpu.dma_semaphore, #tpu.memory_space<semaphore_mem>>) src(%arg3 : memref<16x128xf32, #tpu.memory_space<vmem>>) dst(%arg3 : memref<16x128xf32, #tpu.memory_space<vmem>>)
    return
  }
  func.func @transform_1(%arg0: i32, %arg1: memref<16xi32, #tpu.memory_space<smem>>) -> (i32, i32) {
    %c0_i32 = arith.constant 0 : i32
    %c0_i32_0 = arith.constant 0 : i32
    return %arg0, %c0_i32 : i32, i32
  }
}

</mosaic_0001>

<bundles_post_ra>
// kernel: embed.1
= control target key start
LH: loop header
LB: loop body
LE: loop exit
PB: predicated region body
PF: predicated region fallthrough
CT: control target
= control target key end

     0   :  { %s687_s0 = inlined_call_operand.vmem [shape: s32[16], index: 0, kind: input, shape index: {}]   ;;  %s688_s1 = inlined_call_operand.hbm [shape: f32[256,128], index: 1, kind: input, shape index: {}]   ;;  %s689_s2 = inlined_call_operand.hbm [shape: f32[16,128], index: 2, kind: output, shape index: {}]  }
   0x1   :  { %s7_s11 = sshll.u32 %s687_s0, 4  ;;  %s8_s11 = int_to_ptr.vmem [resolvable:$true] %s7_s11 }
   0x2   :  { %s255_s12 = scalar_lea.vmem %s8_s11, 16  ;;  %p260_p1 = scmp.lt.s32.totalorder %s8_s11, %s8_s11 }
   0x3   :  { %p256_p0 = scmp.ne.s32.totalorder %s8_s11, %s255_s12  ;;  %p261_p2 = scmp.lt.s32.totalorder %s255_s12, %s255_s12 }
   0x5   :  { %p262_p3 = por %p261_p2, %p260_p1 }
   0x7   :  { %p263_p4 = pnand %p262_p3, %p256_p0 }
   0x9   :  { %266 = shalt.err (!%p263_p4)  }
   0xa   :  { %s495_s13 = smov [#allocation4]  }
   0xb   :  { %10 = dma.vmem_to_smem %s8_s11, 16, %s495_s13, [#allocation3] }
   0xc   :  { %485 = dma.done.wait [#allocation3], 16 }
   0xd   :  { %486 = vsyncadd [#allocation3], 4294967280 }
   0xe   :  { %12 = sfence }
   0xf   :  { %13 = vsyncpa [#allocation6], 0  ;;  %s517_s14 = smov 0  }
  0x10 LB: > { %s523_s0 = sshll.u32 %s493_s14, 3  ;;  %s550_s5 = scalar_lea.hbm %s688_s1, 4096  ;;  %s493_s14 = sphi %s517_s14, %s20_s14  }
  0x11   : > { %s23_s15 = sld [smem:[#allocation4 + %s523_s0]]  ;;  %s527_s16 = scalar_lea.vmem [#allocation5], %s523_s0 }
  0x12   : > { %s34_s17 = sshll.u32 %s527_s16, 4  ;;  %s38_s18 = sadd.s32 1, %s523_s0  ;;  %s531_s17 = int_to_ptr.vmem [resolvable:$true] %s34_s17 }
  0x13   : > { %s533_s19 = sld [smem:[#allocation4 + %s38_s18]]  ;;  %s190_s20 = scalar_lea.vmem %s527_s16, 1 [#allocation5] }
  0x14   : > { %s55_s21 = sadd.s32 2, %s523_s0  ;;  %s51_s22 = sshll.u32 %s190_s20, 4  ;;  %s539_s22 = int_to_ptr.vmem [resolvable:$true] %s51_s22 }
  0x15   : > { %s537_s23 = sld [smem:[#allocation4 + %s55_s21]]  ;;  %s195_s24 = scalar_lea.vmem %s527_s16, 2 [#allocation5] }
  0x16   : > { %s68_s26 = sshll.u32 %s195_s24, 4  ;;  %s545_s26 = int_to_ptr.vmem [resolvable:$true] %s68_s26 }
  0x17   : > { %s227_s25 = sshll.u32 %s23_s15, 4 }
  0x18   : > { %s25_s29 = scalar_lea.hbm %s688_s1, %s227_s25 }
  0x19   : > { %s267_s30 = scalar_lea.hbm %s25_s29, 16  ;;  %p270_p6 = scmp.lt.u32.totalorder %s25_s29, %s688_s1 }
  0x1a   : > { %p268_p5 = scmp.ne.s32.totalorder %s25_s29, %s267_s30  ;;  %p271_p7 = scmp.lt.u32.totalorder %s550_s5, %s267_s30 }
  0x1b   : > { %p273_p9 = scmp.lt.u32.totalorder %s267_s30, %s25_s29 }
  0x1c   : > { %p272_p8 = por %p271_p7, %p270_p6 }
  0x1e   : > { %p274_p10 = por %p273_p9, %p272_p8 }
  0x20   : > { %p275_p11 = pnand %p274_p10, %p268_p5 }
  0x22   : > { %278 = shalt.err (!%p275_p11)  }
  0x23   : > { %s279_s8 = scalar_lea.vmem %s531_s17, 16  ;;  %s496_s9 = smov [#allocation5]  }
  0x24   : > { %p280_p12 = scmp.ne.s32.totalorder %s531_s17, %s279_s8  ;;  %s281_s10 = sshll.u32 %s496_s9, 4  ;;  %s558_s10 = int_to_ptr.vmem [resolvable:$false] %s281_s10 }
  0x25   : > { %s561_s11 = scalar_lea.vmem %s558_s10, 256  ;;  %p284_p13 = scmp.lt.s32.totalorder %s531_s17, %s558_s10 }
  0x26   : > { %p285_p0 = scmp.lt.s32.totalorder %s561_s11, %s279_s8 }
  0x28   : > { %p286_p1 = por %p285_p0, %p284_p13 }
  0x2a   : > { %p287_p2 = pnand %p286_p1, %p280_p12 }
  0x2c   : > { %290 = shalt.err (!%p287_p2)  }
  0x2d   : > { %37 = dma.hbm_to_vmem [thread:$0]  %s25_s29, 16, %s531_s17, [#allocation2] }
  0x2e   : > { %s228_s12 = sshll.u32 %s533_s19, 4  ;;  %s72_s13 = sadd.s32 3, %s523_s0 }
  0x2f   : > { %s42_s20 = scalar_lea.hbm %s688_s1, %s228_s12  ;;  %s230_s21 = sshll.u32 %s537_s23, 4 }
  0x30   : > { %s291_s24 = scalar_lea.hbm %s42_s20, 16  ;;  %p294_p4 = scmp.lt.u32.totalorder %s42_s20, %s688_s1 }
  0x31   : > { %p292_p3 = scmp.ne.s32.totalorder %s42_s20, %s291_s24  ;;  %p295_p5 = scmp.lt.u32.totalorder %s550_s5, %s291_s24 }
  0x32   : > { %p297_p7 = scmp.lt.u32.totalorder %s291_s24, %s42_s20 }
  0x33   : > { %p296_p6 = por %p295_p5, %p294_p4 }
  0x35   : > { %p298_p8 = por %p297_p7, %p296_p6 }
  0x37   : > { %p299_p9 = pnand %p298_p8, %p292_p3 }
  0x39   : > { %302 = shalt.err (!%p299_p9)  }
  0x3a   : > { %s303_s17 = scalar_lea.vmem %s539_s22, 16  ;;  %p308_p11 = scmp.lt.s32.totalorder %s539_s22, %s558_s10 }
  0x3b   : > { %p304_p10 = scmp.ne.s32.totalorder %s539_s22, %s303_s17  ;;  %p309_p12 = scmp.lt.s32.totalorder %s561_s11, %s303_s17 }
  0x3d   : > { %p310_p13 = por %p309_p12, %p308_p11 }
  0x3f   : > { %p311_p0 = pnand %p310_p13, %p304_p10 }
  0x41   : > { %314 = shalt.err (!%p311_p0)  }
  0x42   : > { %54 = dma.hbm_to_vmem [thread:$0]  %s42_s20, 16, %s539_s22, [#allocation2] }
  0x43   : > { %s59_s28 = scalar_lea.hbm %s688_s1, %s230_s21  ;;  %s586_s29 = sld [smem:[#allocation4 + %s72_s13]] }
  0x44   : > { %s315_s30 = scalar_lea.hbm %s59_s28, 16  ;;  %p318_p2 = scmp.lt.u32.totalorder %s59_s28, %s688_s1 }
  0x45   : > { %p316_p1 = scmp.ne.s32.totalorder %s59_s28, %s315_s30  ;;  %p319_p3 = scmp.lt.u32.totalorder %s550_s5, %s315_s30 }
  0x46   : > { %p321_p5 = scmp.lt.u32.totalorder %s315_s30, %s59_s28 }
  0x47   : > { %p320_p4 = por %p319_p3, %p318_p2 }
  0x49   : > { %p322_p6 = por %p321_p5, %p320_p4 }
  0x4b   : > { %p323_p7 = pnand %p322_p6, %p316_p1 }
  0x4d   : > { %326 = shalt.err (!%p323_p7)  }
  0x4e   : > { %s327_s22 = scalar_lea.vmem %s545_s26, 16  ;;  %p332_p9 = scmp.lt.s32.totalorder %s545_s26, %s558_s10 }
  0x4f   : > { %p328_p8 = scmp.ne.s32.totalorder %s545_s26, %s327_s22  ;;  %p333_p10 = scmp.lt.s32.totalorder %s561_s11, %s327_s22 }
  0x51   : > { %p334_p11 = por %p333_p10, %p332_p9 }
  0x53   : > { %p335_p12 = pnand %p334_p11, %p328_p8 }
  0x55   : > { %338 = shalt.err (!%p335_p12)  }
  0x56   : > { %71 = dma.hbm_to_vmem [thread:$0]  %s59_s28, 16, %s545_s26, [#allocation2] }
  0x57   : > { %s200_s6 = scalar_lea.vmem %s527_s16, 3 [#allocation5]  ;;  %s89_s7 = sadd.s32 4, %s523_s0 }
  0x58   : > { %s85_s8 = sshll.u32 %s200_s6, 4  ;;  %s600_s9 = sld [smem:[#allocation4 + %s89_s7]]  ;;  %s86_s8 = int_to_ptr.vmem [resolvable:$true] %s85_s8 }
  0x59   : > { %s205_s12 = scalar_lea.vmem %s527_s16, 4 [#allocation5]  ;;  %s106_s15 = sadd.s32 5, %s523_s0 }
  0x5a   : > { %s102_s13 = sshll.u32 %s205_s12, 4  ;;  %s232_s18 = sshll.u32 %s586_s29, 4  ;;  %s605_s13 = int_to_ptr.vmem [resolvable:$true] %s102_s13 }
  0x5b   : > { %s76_s24 = scalar_lea.hbm %s688_s1, %s232_s18  ;;  %s610_s25 = sld [smem:[#allocation4 + %s106_s15]] }
  0x5c   : > { %s339_s26 = scalar_lea.hbm %s76_s24, 16  ;;  %p342_p0 = scmp.lt.u32.totalorder %s76_s24, %s688_s1 }
  0x5d   : > { %p340_p13 = scmp.ne.s32.totalorder %s76_s24, %s339_s26  ;;  %p343_p1 = scmp.lt.u32.totalorder %s550_s5, %s339_s26 }
  0x5e   : > { %p345_p3 = scmp.lt.u32.totalorder %s339_s26, %s76_s24 }
  0x5f   : > { %p344_p2 = por %p343_p1, %p342_p0 }
  0x61   : > { %p346_p4 = por %p345_p3, %p344_p2 }
  0x63   : > { %p347_p5 = pnand %p346_p4, %p340_p13 }
  0x65   : > { %350 = shalt.err (!%p347_p5)  }
  0x66   : > { %s351_s19 = scalar_lea.vmem %s86_s8, 16  ;;  %p356_p7 = scmp.lt.s32.totalorder %s86_s8, %s558_s10 }
  0x67   : > { %p352_p6 = scmp.ne.s32.totalorder %s86_s8, %s351_s19  ;;  %p357_p8 = scmp.lt.s32.totalorder %s561_s11, %s351_s19 }
  0x69   : > { %p358_p9 = por %p357_p8, %p356_p7 }
  0x6b   : > { %p359_p10 = pnand %p358_p9, %p352_p6 }
  0x6d   : > { %362 = shalt.err (!%p359_p10)  }
  0x6e   : > { %88 = dma.hbm_to_vmem [thread:$0]  %s76_s24, 16, %s86_s8, [#allocation2] }
  0x6f   : > { %s234_s23 = sshll.u32 %s600_s9, 4  ;;  %s210_s28 = scalar_lea.vmem %s527_s16, 5 [#allocation5] }
  0x70   : > { %s93_s3 = scalar_lea.hbm %s688_s1, %s234_s23  ;;  %s119_s4 = sshll.u32 %s210_s28, 4  ;;  %s120_s4 = int_to_ptr.vmem [resolvable:$true] %s119_s4 }
  0x71   : > { %s363_s22 = scalar_lea.hbm %s93_s3, 16  ;;  %p366_p12 = scmp.lt.u32.totalorder %s93_s3, %s688_s1 }
  0x72   : > { %p364_p11 = scmp.ne.s32.totalorder %s93_s3, %s363_s22  ;;  %p367_p13 = scmp.lt.u32.totalorder %s550_s5, %s363_s22 }
  0x73   : > { %p369_p1 = scmp.lt.u32.totalorder %s363_s22, %s93_s3 }
  0x74   : > { %p368_p0 = por %p367_p13, %p366_p12 }
  0x76   : > { %p370_p2 = por %p369_p1, %p368_p0 }
  0x78   : > { %p371_p3 = pnand %p370_p2, %p364_p11 }
  0x7a   : > { %374 = shalt.err (!%p371_p3)  }
  0x7b   : > { %s375_s8 = scalar_lea.vmem %s605_s13, 16  ;;  %p380_p5 = scmp.lt.s32.totalorder %s605_s13, %s558_s10 }
  0x7c   : > { %p376_p4 = scmp.ne.s32.totalorder %s605_s13, %s375_s8  ;;  %p381_p6 = scmp.lt.s32.totalorder %s561_s11, %s375_s8 }
  0x7e   : > { %p382_p7 = por %p381_p6, %p380_p5 }
  0x80   : > { %p383_p8 = pnand %p382_p7, %p376_p4 }
  0x82   : > { %386 = shalt.err (!%p383_p8)  }
  0x83   : > { %105 = dma.hbm_to_vmem [thread:$0]  %s93_s3, 16, %s605_s13, [#allocation2] }
  0x84   : > { %s123_s9 = sadd.s32 6, %s523_s0  ;;  %s236_s12 = sshll.u32 %s610_s25, 4 }
  0x85   : > { %s125_s15 = sld [smem:[#allocation4 + %s123_s9]]  ;;  %s110_s21 = scalar_lea.hbm %s688_s1, %s236_s12 }
  0x86   : > { %s215_s24 = scalar_lea.vmem %s527_s16, 6 [#allocation5]  ;;  %s387_s26 = scalar_lea.hbm %s110_s21, 16 }
  0x87   : > { %p388_p9 = scmp.ne.s32.totalorder %s110_s21, %s387_s26  ;;  %p390_p10 = scmp.lt.u32.totalorder %s110_s21, %s688_s1 }
  0x88   : > { %p391_p11 = scmp.lt.u32.totalorder %s550_s5, %s387_s26  ;;  %p393_p13 = scmp.lt.u32.totalorder %s387_s26, %s110_s21 }
  0x8a   : > { %p392_p12 = por %p391_p11, %p390_p10 }
  0x8c   : > { %p394_p0 = por %p393_p13, %p392_p12 }
  0x8e   : > { %p395_p1 = pnand %p394_p0, %p388_p9 }
  0x90   : > { %398 = shalt.err (!%p395_p1)  }
  0x91   : > { %s399_s13 = scalar_lea.vmem %s120_s4, 16  ;;  %p404_p3 = scmp.lt.s32.totalorder %s120_s4, %s558_s10 }
  0x92   : > { %p400_p2 = scmp.ne.s32.totalorder %s120_s4, %s399_s13  ;;  %p405_p4 = scmp.lt.s32.totalorder %s561_s11, %s399_s13 }
  0x94   : > { %p406_p5 = por %p405_p4, %p404_p3 }
  0x96   : > { %p407_p6 = pnand %p406_p5, %p400_p2 }
  0x98   : > { %410 = shalt.err (!%p407_p6)  }
  0x99   : > { %122 = dma.hbm_to_vmem [thread:$0]  %s110_s21, 16, %s120_s4, [#allocation2] }
  0x9a   : > { %s136_s25 = sshll.u32 %s215_s24, 4  ;;  %s140_s19 = sadd.s32 7, %s523_s0  ;;  %s137_s25 = int_to_ptr.vmem [resolvable:$true] %s136_s25 }
  0x9b   : > { %s142_s23 = sld [smem:[#allocation4 + %s140_s19]]  ;;  %s220_s28 = scalar_lea.vmem %s527_s16, 7 [#allocation5] }
  0x9c   : > { %s238_s29 = sshll.u32 %s125_s15, 4  ;;  %s153_s30 = sshll.u32 %s220_s28, 4  ;;  %s154_s30 = int_to_ptr.vmem [resolvable:$true] %s153_s30 }
  0x9d   : > { %s127_s6 = scalar_lea.hbm %s688_s1, %s238_s29 }
  0x9e   : > { %s411_s7 = scalar_lea.hbm %s127_s6, 16  ;;  %p414_p8 = scmp.lt.u32.totalorder %s127_s6, %s688_s1 }
  0x9f   : > { %p412_p7 = scmp.ne.s32.totalorder %s127_s6, %s411_s7  ;;  %p415_p9 = scmp.lt.u32.totalorder %s550_s5, %s411_s7 }
  0xa0   : > { %p417_p11 = scmp.lt.u32.totalorder %s411_s7, %s127_s6 }
  0xa1   : > { %p416_p10 = por %p415_p9, %p414_p8 }
  0xa3   : > { %p418_p12 = por %p417_p11, %p416_p10 }
  0xa5   : > { %p419_p13 = pnand %p418_p12, %p412_p7 }
  0xa7   : > { %422 = shalt.err (!%p419_p13)  }
  0xa8   : > { %s423_s0 = scalar_lea.vmem %s137_s25, 16  ;;  %p428_p1 = scmp.lt.s32.totalorder %s137_s25, %s558_s10 }
  0xa9   : > { %p424_p0 = scmp.ne.s32.totalorder %s137_s25, %s423_s0  ;;  %p429_p2 = scmp.lt.s32.totalorder %s561_s11, %s423_s0 }
  0xab   : > { %p430_p3 = por %p429_p2, %p428_p1 }
  0xad   : > { %p431_p4 = pnand %p430_p3, %p424_p0 }
  0xaf   : > { %434 = shalt.err (!%p431_p4)  }
  0xb0   : > { %139 = dma.hbm_to_vmem [thread:$0]  %s127_s6, 16, %s137_s25, [#allocation2] }
  0xb1   : > { %s240_s16 = sshll.u32 %s142_s23, 4 }
  0xb2   : > { %s144_s15 = scalar_lea.hbm %s688_s1, %s240_s16 }
  0xb3   : > { %s435_s18 = scalar_lea.hbm %s144_s15, 16  ;;  %p438_p6 = scmp.lt.u32.totalorder %s144_s15, %s688_s1 }
  0xb4   : > { %p436_p5 = scmp.ne.s32.totalorder %s144_s15, %s435_s18  ;;  %p439_p7 = scmp.lt.u32.totalorder %s550_s5, %s435_s18 }
  0xb5   : > { %p441_p9 = scmp.lt.u32.totalorder %s435_s18, %s144_s15 }
  0xb6   : > { %p440_p8 = por %p439_p7, %p438_p6 }
  0xb8   : > { %p442_p10 = por %p441_p9, %p440_p8 }
  0xba   : > { %p443_p11 = pnand %p442_p10, %p436_p5 }
  0xbc   : > { %446 = shalt.err (!%p443_p11)  }
  0xbd   : > { %s447_s24 = scalar_lea.vmem %s154_s30, 16  ;;  %p452_p13 = scmp.lt.s32.totalorder %s154_s30, %s558_s10 }
  0xbe   : > { %p448_p12 = scmp.ne.s32.totalorder %s154_s30, %s447_s24  ;;  %p453_p0 = scmp.lt.s32.totalorder %s561_s11, %s447_s24 }
  0xc0   : > { %p454_p1 = por %p453_p0, %p452_p13 }
  0xc2   : > { %p455_p2 = pnand %p454_p1, %p448_p12 }
  0xc4   : > { %458 = shalt.err (!%p455_p2)  }
  0xc5   : > { %156 = dma.hbm_to_vmem [thread:$0]  %s144_s15, 16, %s154_s30, [#allocation2] }
  0xc6   : > { %s20_s14 = sadd.s32 1, %s493_s14  }
  0xc7   : > { %p17_p3 = scmp.ge.s32.totalorder %s20_s14, 2  }
  0xc9   :  { %19 = sbr.rel (!%p17_p3) target bundleno = 16 (0x10), region = 75 }
  0xd0   :  { %487 = dma.done.wait [#allocation2], 256 }
  0xd1   :  { %488 = vsyncadd [#allocation2], 4294967040  ;;  %p460_p4 = scmp.ne.s32.totalorder %s558_s10, %s561_s11  ;;  %p464_p5 = scmp.lt.s32.totalorder %s558_s10, %s558_s10 }
  0xd2   :  { %p465_p6 = scmp.lt.s32.totalorder %s561_s11, %s561_s11 }
  0xd4   :  { %p466_p7 = por %p465_p6, %p464_p5 }
  0xd6   :  { %p467_p8 = pnand %p466_p7, %p460_p4 }
  0xd8   :  { %470 = shalt.err (!%p467_p8)
}
  0xd9   :  { %s471_s27 = scalar_lea.hbm %s689_s2, 256 }
  0xda   :  { %p472_p9 = scmp.ne.s32.totalorder %s689_s2, %s471_s27  ;;  %p475_p10 = scmp.lt.u32.totalorder %s471_s27, %s689_s2 }
  0xdc   :  { %p477_p11 = pnand %p475_p10, %p472_p9 }
  0xde   :  { %480 = shalt.err (!%p477_p11)
}
  0xdf   :  { %s497_s25 = smov 128   ;;  %s498_s11 = smov 8  }
  0xe0   :  { %171 = dma.vmem_to_hbm [thread:$0]  %s558_s10, 256, %s689_s2, [#allocation6], %s497_s25, %s497_s25, %s498_s11  }
  0xe1   :  { %489 = dma.done.wait [#allocation6], 256  }
  0xe2   :  { %490 = vsyncadd [#allocation6], 4294967040 }
  0xe3   :  { %175 = vsyncpa [#allocation6], 1 }
  0xe4   :  { %176 = vsyncmov [#allocation2] }
  0xe7   :  { %s177_s28 = vpop.sfrf %176 }
  0xe8   :  { %p242_p12 = scmp.ne.s32.totalorder %s177_s28, 0 }
  0xea   :  { %181 = shalt.err (%p242_p12)  }

</bundles_post_ra>
